<compile_context>
chip_gen: v7x
topology: tpu7x:2x2x1
jax: 0.10.0
libtpu: 0.0.40
codegen_flags: <defaults>
</compile_context>

<pallas_src>
import functools

import numpy as np
import jax
import jax.numpy as jnp
from jax.experimental import pallas as pl
from jax.experimental.pallas import tpu as pltpu


def _fourier_recurrence_kernel(x_ref, p_ref, o_ref, *, K):
    """Fourier activation via sin/cos angle-addition recurrence (n_k = 1..K).

    p_ref rows: [0]=theta (2*pi/exp(logL)), [1]=bias,
                [2:2+K]   = weight_k*cos(phase_k)/k!,
                [2+K:2+2K]= weight_k*sin(phase_k)/k!
    """
    x = x_ref[...].astype(jnp.float32)                 # (TB, L)
    theta = p_ref[0:1, :]                              # (1, L)
    a = x * theta
    s1 = jnp.sin(a)                                    # EUP
    c1 = jnp.cos(a)                                    # EUP
    # k = 1 term initializes the accumulator (no zeros + add pass).
    acc = p_ref[2:3, :] * s1 + p_ref[2 + K:3 + K, :] * c1
    s, c = s1, c1
    for k in range(1, K):
        # sin/cos((k+1)*theta*x) by angle addition -- pure VALU work.
        s, c = s * c1 + c * s1, c * c1 - s * s1
        acc = acc + p_ref[2 + k:3 + k, :] * s + p_ref[2 + K + k:3 + K + k, :] * c
    o_ref[...] = (acc + p_ref[1:2, :]).astype(o_ref.dtype)


def _fourier_generic_kernel(x_ref, p_ref, o_ref, *, K):
    """Fallback for arbitrary n_k.

    p_ref rows: [0:K]=freq_k, [K:2K]=phase_k, [2K:3K]=weight_k/k!, [3K]=bias
    """
    x = x_ref[...].astype(jnp.float32)                 # (TB, L)
    acc = None
    for k in range(K):
        f = p_ref[k:k + 1, :]
        ph = p_ref[K + k:K + k + 1, :]
        w = p_ref[2 * K + k:2 * K + k + 1, :]
        term = w * jnp.sin(x * f + ph)
        acc = term if acc is None else acc + term
    o_ref[...] = (acc + p_ref[3 * K:3 * K + 1, :]).astype(o_ref.dtype)


def fourier_activation(x, n, logL, phase, weight, bias, *, tb=1024):
    """x: (B, D). Returns (B, D), same semantics as the PyTorch module forward."""
    B, D = x.shape
    K = int(n.shape[0])

    # ---- parameter folding (plain JAX, done once) ---------------------------
    nf = n.astype(jnp.float32)                                   # (K,)
    inv_L = 1.0 / jnp.exp(logL.reshape(1, D))                    # (1, D)
    fact = jnp.exp(jax.lax.lgamma(nf + 1.0))                     # (K,) = n_k!
    w_scaled = weight.reshape(D, K).T / fact[:, None]            # (K, D)
    phase_t = phase.reshape(D, K).T                              # (K, D)
    bias2 = bias.reshape(1, D)                                   # (1, D)

    # Recurrence path is only valid for consecutive n_k = 1..K.
    try:
        n_host = np.asarray(jax.device_get(n)).astype(np.float64)
        use_recurrence = bool(np.array_equal(n_host, np.arange(1, K + 1)))
    except Exception:  # traced n -> fall back to the generic sin path
        use_recurrence = False

    if use_recurrence:
        theta = 2.0 * jnp.pi * inv_L                             # (1, D)
        wc = w_scaled * jnp.cos(phase_t)                         # (K, D)
        ws = w_scaled * jnp.sin(phase_t)                         # (K, D)
        params = jnp.concatenate([theta, bias2, wc, ws], axis=0)            # (2K+2, D)
        kernel = functools.partial(_fourier_recurrence_kernel, K=K)
    else:
        freq = (2.0 * jnp.pi * nf)[:, None] * inv_L              # (K, D)
        params = jnp.concatenate([freq, phase_t, w_scaled, bias2], axis=0)  # (3K+1, D)
        kernel = functools.partial(_fourier_generic_kernel, K=K)

    # ---- lane-dense packing: fold G batch rows into the lane axis -----------
    G = 128 // D if (D < 128 and 128 % D == 0) else 1
    L = G * D
    if G > 1:
        params = jnp.tile(params, (1, G))                        # (P, L)
    P = params.shape[0]

    # ---- batch tiling / padding (no divisibility requirement on B) ----------
    rows = -(-B // G)                                            # packed rows needed
    tb_rows = min(tb, rows)
    if rows >= 16:
        # keep >= 2 grid steps so the batch axis can shard across v7x's 2 TCs
        tb_rows = min(tb_rows, (rows + 1) // 2)
    tb_rows = -(-tb_rows // 8) * 8                               # sublane multiple
    rows_pad = -(-rows // tb_rows) * tb_rows
    B_pad = rows_pad * G
    if B_pad != B:
        x = jnp.pad(x, ((0, B_pad - B), (0, 0)))
    x_packed = x.reshape(rows_pad, L)
    grid = rows_pad // tb_rows

    out = pl.pallas_call(
        kernel,
        out_shape=jax.ShapeDtypeStruct((rows_pad, L), x.dtype),
        grid_spec=pltpu.PrefetchScalarGridSpec(
            num_scalar_prefetch=0,
            grid=(grid,),
            in_specs=[
                pl.BlockSpec((tb_rows, L), lambda i: (i, 0)),    # x tile
                pl.BlockSpec((P, L), lambda i: (0, 0)),          # folded params
            ],
            out_specs=pl.BlockSpec((tb_rows, L), lambda i: (i, 0)),
        ),
        compiler_params=pltpu.CompilerParams(
            dimension_semantics=("parallel",),
            # sized well under v7x's 64 MiB physical VMEM (also fine on v5e/v6e)
            vmem_limit_bytes=32 * 1024 * 1024,
        ),
    )(x_packed, params)

    return out.reshape(B_pad, D)[:B]


def fourier_activation_ref(x, n, logL, phase, weight, bias):
    """Pure-JAX reference mirroring the PyTorch forward exactly."""
    nf = n.astype(jnp.float32)                                   # (K,)
    expL = jnp.exp(logL)                                         # (1, D, 1)
    arg = 2.0 * nf * jnp.pi * x[..., None] / expL + phase[None, :, :]
    fact = jnp.exp(jax.lax.lgamma(nf + 1.0))
    return (weight * jnp.sin(arg) / fact).sum(-1) + bias


if __name__ == "__main__":
    B, D, K = 16, 32, 8  # batch, inputDim, expansionOrder

    key = jax.random.PRNGKey(0)
    kx, k1, k2, k3, k4 = jax.random.split(key, 5)

    # Deterministic parameter init matching the module's __init__ shapes.
    n = jnp.arange(1, K + 1, dtype=jnp.float32)                            # (K,)
    logL = jax.random.normal(k1, (1, D, 1), dtype=jnp.float32)             # (1, D, 1)
    phase = jnp.pi * jax.random.uniform(k2, (D, K), dtype=jnp.float32)     # (D, K)
    weight = jax.random.normal(k3, (D, K), dtype=jnp.float32) / jnp.exp(logL)  # (1, D, K)
    bias = jax.random.normal(k4, (D,), dtype=jnp.float32) / D              # (D,)

    x = jax.random.normal(kx, (B, D), dtype=jnp.float32)

    # --- main path: consecutive n -> angle-addition recurrence kernel --------
    out = jax.block_until_ready(fourier_activation(x, n, logL, phase, weight, bias))
    ref = fourier_activation_ref(x, n, logL, phase, weight, bias)
    assert out.shape == (B, D)
    # Folded constants + angle-addition recurrence round differently than the
    # direct formula; 1e-3 comfortably separates that from real bugs.
    assert jnp.allclose(out, ref, atol=1e-3, rtol=1e-3), "recurrence path mismatch"

    # --- ragged batch (exercises wrapper padding / tail handling) ------------
    xb = jax.random.normal(jax.random.PRNGKey(7), (50, D), dtype=jnp.float32)
    out_b = jax.block_until_ready(fourier_activation(xb, n, logL, phase, weight, bias))
    ref_b = fourier_activation_ref(xb, n, logL, phase, weight, bias)
    assert out_b.shape == (50, D)
    assert jnp.allclose(out_b, ref_b, atol=1e-3, rtol=1e-3), "ragged-batch mismatch"

    # --- non-consecutive n -> generic sin fallback kernel ---------------------
    n_irr = jnp.array([1.0, 3.0, 4.0, 7.0], dtype=jnp.float32)
    K2 = int(n_irr.shape[0])
    out_g = jax.block_until_ready(
        fourier_activation(x, n_irr, logL, phase[:, :K2], weight[:, :, :K2], bias))
    ref_g = fourier_activation_ref(x, n_irr, logL, phase[:, :K2], weight[:, :, :K2], bias)
    assert jnp.allclose(out_g, ref_g, atol=1e-3, rtol=1e-3), "generic path mismatch"

    print("KERNEL_OK")
</pallas_src>

<mosaic_0001>
module attributes {stable_mosaic.version = 11 : i64} {
  func.func @_fourier_recurrence_kernel(%arg0: i32, %arg1: memref<8x128xf32, #tpu.memory_space<vmem>>, %arg2: memref<18x128xf32, #tpu.memory_space<vmem>>, %arg3: memref<8x128xf32, #tpu.memory_space<vmem>>) attributes {dimension_semantics = [#tpu.dimension_semantics<parallel>], iteration_bounds = array<i64: 1>, scalar_prefetch = 0 : i64, scratch_operands = 0 : i64, tpu.core_type = #tpu.core_type<tc>, window_params = [{transform_indices = @transform_0, window_bounds = array<i64: 8, 128>}, {pipeline_mode = #tpu.pipeline_mode<synchronous>, transform_indices = @transform_1, window_bounds = array<i64: 18, 128>}, {transform_indices = @transform_2, window_bounds = array<i64: 8, 128>}]} {
    %c0 = arith.constant 0 : index
    %c0_0 = arith.constant 0 : index
    %0 = vector.load %arg1[%c0, %c0_0] : memref<8x128xf32, #tpu.memory_space<vmem>>, vector<8x128xf32>
    %c0_1 = arith.constant 0 : index
    %c0_2 = arith.constant 0 : index
    %1 = vector.load %arg2[%c0_1, %c0_2] : memref<18x128xf32, #tpu.memory_space<vmem>>, vector<1x128xf32>
    %2 = vector.broadcast %1 : vector<1x128xf32> to vector<8x128xf32>
    %3 = arith.mulf %0, %2 : vector<8x128xf32>
    %4 = math.sin %3 : vector<8x128xf32>
    %5 = math.cos %3 : vector<8x128xf32>
    %c2 = arith.constant 2 : index
    %c0_3 = arith.constant 0 : index
    %6 = vector.load %arg2[%c2, %c0_3] : memref<18x128xf32, #tpu.memory_space<vmem>>, vector<1x128xf32>
    %7 = vector.broadcast %6 : vector<1x128xf32> to vector<8x128xf32>
    %8 = arith.mulf %7, %4 : vector<8x128xf32>
    %c10 = arith.constant 10 : index
    %c0_4 = arith.constant 0 : index
    %9 = vector.load %arg2[%c10, %c0_4] : memref<18x128xf32, #tpu.memory_space<vmem>>, vector<1x128xf32>
    %10 = vector.broadcast %9 : vector<1x128xf32> to vector<8x128xf32>
    %11 = arith.mulf %10, %5 : vector<8x128xf32>
    %12 = arith.addf %8, %11 : vector<8x128xf32>
    %13 = arith.mulf %4, %5 : vector<8x128xf32>
    %14 = arith.mulf %5, %4 : vector<8x128xf32>
    %15 = arith.addf %13, %14 : vector<8x128xf32>
    %16 = arith.mulf %5, %5 : vector<8x128xf32>
    %17 = arith.mulf %4, %4 : vector<8x128xf32>
    %18 = arith.subf %16, %17 : vector<8x128xf32>
    %c3 = arith.constant 3 : index
    %c0_5 = arith.constant 0 : index
    %19 = vector.load %arg2[%c3, %c0_5] : memref<18x128xf32, #tpu.memory_space<vmem>>, vector<1x128xf32>
    %20 = vector.broadcast %19 : vector<1x128xf32> to vector<8x128xf32>
    %21 = arith.mulf %20, %15 : vector<8x128xf32>
    %22 = arith.addf %12, %21 : vector<8x128xf32>
    %c11 = arith.constant 11 : index
    %c0_6 = arith.constant 0 : index
    %23 = vector.load %arg2[%c11, %c0_6] : memref<18x128xf32, #tpu.memory_space<vmem>>, vector<1x128xf32>
    %24 = vector.broadcast %23 : vector<1x128xf32> to vector<8x128xf32>
    %25 = arith.mulf %24, %18 : vector<8x128xf32>
    %26 = arith.addf %22, %25 : vector<8x128xf32>
    %27 = arith.mulf %15, %5 : vector<8x128xf32>
    %28 = arith.mulf %18, %4 : vector<8x128xf32>
    %29 = arith.addf %27, %28 : vector<8x128xf32>
    %30 = arith.mulf %18, %5 : vector<8x128xf32>
    %31 = arith.mulf %15, %4 : vector<8x128xf32>
    %32 = arith.subf %30, %31 : vector<8x128xf32>
    %c4 = arith.constant 4 : index
    %c0_7 = arith.constant 0 : index
    %33 = vector.load %arg2[%c4, %c0_7] : memref<18x128xf32, #tpu.memory_space<vmem>>, vector<1x128xf32>
    %34 = vector.broadcast %33 : vector<1x128xf32> to vector<8x128xf32>
    %35 = arith.mulf %34, %29 : vector<8x128xf32>
    %36 = arith.addf %26, %35 : vector<8x128xf32>
    %c12 = arith.constant 12 : index
    %c0_8 = arith.constant 0 : index
    %37 = vector.load %arg2[%c12, %c0_8] : memref<18x128xf32, #tpu.memory_space<vmem>>, vector<1x128xf32>
    %38 = vector.broadcast %37 : vector<1x128xf32> to vector<8x128xf32>
    %39 = arith.mulf %38, %32 : vector<8x128xf32>
    %40 = arith.addf %36, %39 : vector<8x128xf32>
    %41 = arith.mulf %29, %5 : vector<8x128xf32>
    %42 = arith.mulf %32, %4 : vector<8x128xf32>
    %43 = arith.addf %41, %42 : vector<8x128xf32>
    %44 = arith.mulf %32, %5 : vector<8x128xf32>
    %45 = arith.mulf %29, %4 : vector<8x128xf32>
    %46 = arith.subf %44, %45 : vector<8x128xf32>
    %c5 = arith.constant 5 : index
    %c0_9 = arith.constant 0 : index
    %47 = vector.load %arg2[%c5, %c0_9] : memref<18x128xf32, #tpu.memory_space<vmem>>, vector<1x128xf32>
    %48 = vector.broadcast %47 : vector<1x128xf32> to vector<8x128xf32>
    %49 = arith.mulf %48, %43 : vector<8x128xf32>
    %50 = arith.addf %40, %49 : vector<8x128xf32>
    %c13 = arith.constant 13 : index
    %c0_10 = arith.constant 0 : index
    %51 = vector.load %arg2[%c13, %c0_10] : memref<18x128xf32, #tpu.memory_space<vmem>>, vector<1x128xf32>
    %52 = vector.broadcast %51 : vector<1x128xf32> to vector<8x128xf32>
    %53 = arith.mulf %52, %46 : vector<8x128xf32>
    %54 = arith.addf %50, %53 : vector<8x128xf32>
    %55 = arith.mulf %43, %5 : vector<8x128xf32>
    %56 = arith.mulf %46, %4 : vector<8x128xf32>
    %57 = arith.addf %55, %56 : vector<8x128xf32>
    %58 = arith.mulf %46, %5 : vector<8x128xf32>
    %59 = arith.mulf %43, %4 : vector<8x128xf32>
    %60 = arith.subf %58, %59 : vector<8x128xf32>
    %c6 = arith.constant 6 : index
    %c0_11 = arith.constant 0 : index
    %61 = vector.load %arg2[%c6, %c0_11] : memref<18x128xf32, #tpu.memory_space<vmem>>, vector<1x128xf32>
    %62 = vector.broadcast %61 : vector<1x128xf32> to vector<8x128xf32>
    %63 = arith.mulf %62, %57 : vector<8x128xf32>
    %64 = arith.addf %54, %63 : vector<8x128xf32>
    %c14 = arith.constant 14 : index
    %c0_12 = arith.constant 0 : index
    %65 = vector.load %arg2[%c14, %c0_12] : memref<18x128xf32, #tpu.memory_space<vmem>>, vector<1x128xf32>
    %66 = vector.broadcast %65 : vector<1x128xf32> to vector<8x128xf32>
    %67 = arith.mulf %66, %60 : vector<8x128xf32>
    %68 = arith.addf %64, %67 : vector<8x128xf32>
    %69 = arith.mulf %57, %5 : vector<8x128xf32>
    %70 = arith.mulf %60, %4 : vector<8x128xf32>
    %71 = arith.addf %69, %70 : vector<8x128xf32>
    %72 = arith.mulf %60, %5 : vector<8x128xf32>
    %73 = arith.mulf %57, %4 : vector<8x128xf32>
    %74 = arith.subf %72, %73 : vector<8x128xf32>
    %c7 = arith.constant 7 : index
    %c0_13 = arith.constant 0 : index
    %75 = vector.load %arg2[%c7, %c0_13] : memref<18x128xf32, #tpu.memory_space<vmem>>, vector<1x128xf32>
    %76 = vector.broadcast %75 : vector<1x128xf32> to vector<8x128xf32>
    %77 = arith.mulf %76, %71 : vector<8x128xf32>
    %78 = arith.addf %68, %77 : vector<8x128xf32>
    %c15 = arith.constant 15 : index
    %c0_14 = arith.constant 0 : index
    %79 = vector.load %arg2[%c15, %c0_14] : memref<18x128xf32, #tpu.memory_space<vmem>>, vector<1x128xf32>
    %80 = vector.broadcast %79 : vector<1x128xf32> to vector<8x128xf32>
    %81 = arith.mulf %80, %74 : vector<8x128xf32>
    %82 = arith.addf %78, %81 : vector<8x128xf32>
    %83 = arith.mulf %71, %5 : vector<8x128xf32>
    %84 = arith.mulf %74, %4 : vector<8x128xf32>
    %85 = arith.addf %83, %84 : vector<8x128xf32>
    %86 = arith.mulf %74, %5 : vector<8x128xf32>
    %87 = arith.mulf %71, %4 : vector<8x128xf32>
    %88 = arith.subf %86, %87 : vector<8x128xf32>
    %c8 = arith.constant 8 : index
    %c0_15 = arith.constant 0 : index
    %89 = vector.load %arg2[%c8, %c0_15] : memref<18x128xf32, #tpu.memory_space<vmem>>, vector<1x128xf32>
    %90 = vector.broadcast %89 : vector<1x128xf32> to vector<8x128xf32>
    %91 = arith.mulf %90, %85 : vector<8x128xf32>
    %92 = arith.addf %82, %91 : vector<8x128xf32>
    %c16 = arith.constant 16 : index
    %c0_16 = arith.constant 0 : index
    %93 = vector.load %arg2[%c16, %c0_16] : memref<18x128xf32, #tpu.memory_space<vmem>>, vector<1x128xf32>
    %94 = vector.broadcast %93 : vector<1x128xf32> to vector<8x128xf32>
    %95 = arith.mulf %94, %88 : vector<8x128xf32>
    %96 = arith.addf %92, %95 : vector<8x128xf32>
    %97 = arith.mulf %85, %5 : vector<8x128xf32>
    %98 = arith.mulf %88, %4 : vector<8x128xf32>
    %99 = arith.addf %97, %98 : vector<8x128xf32>
    %100 = arith.mulf %88, %5 : vector<8x128xf32>
    %101 = arith.mulf %85, %4 : vector<8x128xf32>
    %102 = arith.subf %100, %101 : vector<8x128xf32>
    %c9 = arith.constant 9 : index
    %c0_17 = arith.constant 0 : index
    %103 = vector.load %arg2[%c9, %c0_17] : memref<18x128xf32, #tpu.memory_space<vmem>>, vector<1x128xf32>
    %104 = vector.broadcast %103 : vector<1x128xf32> to vector<8x128xf32>
    %105 = arith.mulf %104, %99 : vector<8x128xf32>
    %106 = arith.addf %96, %105 : vector<8x128xf32>
    %c17 = arith.constant 17 : index
    %c0_18 = arith.constant 0 : index
    %107 = vector.load %arg2[%c17, %c0_18] : memref<18x128xf32, #tpu.memory_space<vmem>>, vector<1x128xf32>
    %108 = vector.broadcast %107 : vector<1x128xf32> to vector<8x128xf32>
    %109 = arith.mulf %108, %102 : vector<8x128xf32>
    %110 = arith.addf %106, %109 : vector<8x128xf32>
    %c1 = arith.constant 1 : index
    %c0_19 = arith.constant 0 : index
    %111 = vector.load %arg2[%c1, %c0_19] : memref<18x128xf32, #tpu.memory_space<vmem>>, vector<1x128xf32>
    %112 = vector.broadcast %111 : vector<1x128xf32> to vector<8x128xf32>
    %113 = arith.addf %110, %112 : vector<8x128xf32>
    %c0_20 = arith.constant 0 : index
    %c0_21 = arith.constant 0 : index
    %114 = vector.load %arg3[%c0_20, %c0_21] : memref<8x128xf32, #tpu.memory_space<vmem>>, vector<8x128xf32>
    tpu.vector_store %arg3[%c0_20, %c0_21], %113 {strides = array<i32>} : memref<8x128xf32, #tpu.memory_space<vmem>>, vector<8x128xf32>,
    return
  }
  func.func @transform_0(%arg0: i32) -> (i32, i32) {
    %c0_i32 = arith.constant 0 : i32
    %c0_i32_0 = arith.constant 0 : i32
    return %arg0, %c0_i32 : i32, i32
  }
  func.func @transform_1(%arg0: i32) -> (i32, i32) {
    %c0_i32 = arith.constant 0 : i32
    %c0_i32_0 = arith.constant 0 : i32
    %c0_i32_1 = arith.constant 0 : i32
    return %c0_i32, %c0_i32_0 : i32, i32
  }
  func.func @transform_2(%arg0: i32) -> (i32, i32) {
    %c0_i32 = arith.constant 0 : i32
    %c0_i32_0 = arith.constant 0 : i32
    return %arg0, %c0_i32 : i32, i32
  }
}

</mosaic_0001>

<bundles_post_ra>
// kernel: tpu_custom_call.1
= control target key start
LH: loop header
LB: loop body
LE: loop exit
PB: predicated region body
PF: predicated region fallthrough
CT: control target
= control target key end

     0   :  { %7 = vsyncpa [#allocation3], 0  ;;  %s670_s0 = inlined_call_operand.hbm [shape: f32[8,128], index: 0, kind: input, shape index: {}]   ;;  %s671_s1 = inlined_call_operand.hbm [shape: f32[18,128], index: 1, kind: input, shape index: {}]   ;;  %s672_s2 = inlined_call_operand.hbm [shape: f32[8,128], index: 2, kind: output, shape index: {}]  }
   0x1   :  { %8 = vsyncpa [#allocation6], 0 }
   0x2   :  { %9 = vsyncpa [#allocation4], 0  ;;  %s544_s9 = smov [#allocation2]   ;;  %s545_s11 = smov [#allocation5]  }
   0x3   :  { %s16_s10 = sshll.u32 %s544_s9, 4  ;;  %s25_s12 = sshll.u32 %s545_s11, 4  ;;  %s17_s10 = int_to_ptr.vmem [resolvable:$true] %s16_s10  ;;  %s570_s12 = int_to_ptr.vmem [resolvable:$true] %s25_s12 }
   0x4   :  { %s472_s15 = scalar_lea.hbm %s670_s0, 128 }
   0x5   :  { %p473_p0 = scmp.ne.s32.totalorder %s670_s0, %s472_s15  ;;  %p476_p1 = scmp.lt.u32.totalorder %s472_s15, %s670_s0 }
   0x7   :  { %p478_p2 = pnand %p476_p1, %p473_p0 }
   0x9   :  { %481 = shalt.err (!%p478_p2)
}
   0xa   :  { %s482_s20 = scalar_lea.vmem %s17_s10, 128  ;;  %p487_p4 = scmp.lt.s32.totalorder %s17_s10, %s17_s10 }
   0xb   :  { %p483_p3 = scmp.ne.s32.totalorder %s17_s10, %s482_s20  ;;  %p488_p5 = scmp.lt.s32.totalorder %s482_s20, %s482_s20 }
   0xd   :  { %p489_p6 = por %p488_p5, %p487_p4 }
   0xf   :  { %p490_p7 = pnand %p489_p6, %p483_p3 }
  0x11   :  { %493 = shalt.err (!%p490_p7)
}
  0x12   :  { %19 = dma.hbm_to_vmem [thread:$0]  %s670_s0, 128, %s17_s10, [#allocation3]  }
  0x13   :  { %s494_s25 = scalar_lea.hbm %s671_s1, 384 }
  0x14   :  { %p495_p8 = scmp.ne.s32.totalorder %s671_s1, %s494_s25  ;;  %p498_p9 = scmp.lt.u32.totalorder %s494_s25, %s671_s1 }
  0x16   :  { %p500_p10 = pnand %p498_p9, %p495_p8 }
  0x18   :  { %503 = shalt.err (!%p500_p10)
}
  0x19   :  { %s504_s30 = scalar_lea.vmem %s570_s12, 384  ;;  %p509_p12 = scmp.lt.s32.totalorder %s570_s12, %s570_s12 }
  0x1a   :  { %p505_p11 = scmp.ne.s32.totalorder %s570_s12, %s504_s30  ;;  %p510_p13 = scmp.lt.s32.totalorder %s504_s30, %s504_s30 }
  0x1c   :  { %p511_p0 = por %p510_p13, %p509_p12 }
  0x1e   :  { %p512_p1 = pnand %p511_p0, %p505_p11 }
  0x20   :  { %515 = shalt.err (!%p512_p1)
}
  0x21   :  { %s546_s0 = smov 128   ;;  %s547_s3 = smov 8  }
  0x22   :  { %31 = dma.hbm_to_vmem [thread:$0]  %s671_s1, 384, %s570_s12, [#allocation6], %s546_s0, %s546_s0, %s547_s3  }
  0x23   :  { %538 = dma.done.wait [#allocation3], 128  }
  0x24   :  { %539 = vsyncadd [#allocation3], 4294967168 }
  0x25   :  { %540 = dma.done.wait [#allocation6], 384  }
  0x26   :  { %541 = vsyncadd [#allocation6], 4294966912  ;;  %v38_v0 = vld [vmem:[#allocation2] sm:$0xff]  ;;  %v427_v1 = vld [vmem:[#allocation5] ss:$0 sm:$0xff]  ;;  %s554_s1 = smov [#allocation7]  }
  0x27   :  { %v601_v2 = vmul.f32 %v427_v1, %v38_v0  ;;  %v548_v14 = vmov 683565275   ;;  %v549_v16 = vmov 2475754826   ;;  %v550_v18 = vmov 2131351028  }
  0x28   :  { %v551_v20 = vmov 2102212464   ;;  %v552_v22 = vmov 920167782   ;;  %v553_v29 = vmov 1326507024  }
  0x29   :  { %v48_v3 = vand.u32 2139095040, %v601_v2  ;;  %v45_v5 = vand.u32 2147483647, %v601_v2  ;;  %vm47_vm7 = vcmp.lt.s32.totalorder %v601_v2, 0  ;;  %vm137_vm15 = vweird.f32 %v601_v2  ;;  %s417_s6 = sshll.u32 %s554_s1, 4  ;;  %s418_s6 = int_to_ptr.vmem [resolvable:$true] %s417_s6 }
  0x2a   :  { %s516_s7 = scalar_lea.vmem %s418_s6, 128  ;;  %p521_p3 = scmp.lt.s32.totalorder %s418_s6, %s418_s6 }
  0x2b   :  { %v49_v4 = vshrl.u32 %v48_v3, 23  ;;  %v52_v8 = vand.u32 8388607, %v45_v5  ;;  %vm46_vm8 = vcmp.le.f32.partialorder %v45_v5, 0.7853982  ;;  %p517_p2 = scmp.ne.s32.totalorder %s418_s6, %s516_s7  ;;  %p522_p4 = scmp.lt.s32.totalorder %s516_s7, %s516_s7 }
  0x2d   :  { %v428_v6 = vadd.s32 4294967169, %v49_v4  ;;  %v53_v11 = vor.u32 8388608, %v52_v8  ;;  %p523_p5 = por %p522_p4, %p521_p3 }
  0x2f   :  { %v55_v7 = vadd.s32 1, %v428_v6  ;;  %v93_v31 = vshll.u32 %v53_v11, 8  ;;  %p524_p6 = pnand %p523_p5, %p517_p2 }
  0x31   :  { %vm56_vm0 = vcmp.gt.s32.totalorder %v55_v7, 0 }
  0x32   :  { %v57_v9 = vsel %vm56_vm0, %v55_v7, 0 }
  0x33   :  { %v59_v10 = vand.u32 31, %v57_v9  ;;  %v58_v12 = vshrl.u32 %v57_v9, 5 }
  0x35   :  { %v60_v13 = vsub.s32 32, %v59_v10  ;;  %v62_v15 = vshll.u32 %v548_v14, %v59_v10  ;;  %v65_v17 = vshll.u32 %v549_v16, %v59_v10  ;;  %v68_v19 = vshll.u32 %v550_v18, %v59_v10 }
  0x36   :  { %v71_v21 = vshll.u32 %v551_v20, %v59_v10  ;;  %v74_v23 = vshll.u32 %v552_v22, %v59_v10  ;;  %vm77_vm1 = vcmp.lt.s32.totalorder %v58_v12, 1  ;;  %vm80_vm2 = vcmp.lt.s32.totalorder %v58_v12, 4 }
  0x37   :  { %v61_v24 = vshrl.u32 %v548_v14, %v60_v13  ;;  %v63_v25 = vshrl.u32 %v549_v16, %v60_v13  ;;  %v66_v26 = vshrl.u32 %v550_v18, %v60_v13  ;;  %v69_v27 = vshrl.u32 %v551_v20, %v60_v13 }
  0x38   :  { %v72_v28 = vshrl.u32 %v552_v22, %v60_v13  ;;  %v75_v30 = vshrl.u32 %v553_v29, %v60_v13  ;;  %vm78_vm3 = vcmp.lt.s32.totalorder %v58_v12, 2  ;;  %vm79_vm4 = vcmp.lt.s32.totalorder %v58_v12, 3 }
  0x39   :  { %v64_v32 = vor.u32 %v63_v25, %v62_v15  ;;  %v67_v33 = vor.u32 %v66_v26, %v65_v17  ;;  %v70_v34 = vor.u32 %v69_v27, %v68_v19 }
  0x3a   :  { %v73_v35 = vor.u32 %v72_v28, %v71_v21  ;;  %v76_v36 = vor.u32 %v75_v30, %v74_v23 }
  0x3b   :  { %v81_v37 = vsel %vm77_vm1, %v61_v24, %v64_v32  ;;  %v82_v38 = vsel %vm80_vm2, %v70_v34, 2102212464  ;;  %v85_v39 = vsel %vm77_vm1, %v64_v32, %v67_v33  ;;  %v89_v40 = vsel %vm77_vm1, %v67_v33, %v70_v34  ;;  %v436_v32 = vld [vmem:[#allocation5 + $0x2] ss:$0 sm:$0xff] }
  0x3c   :  { %v83_v41 = vsel %vm79_vm4, %v67_v33, %v82_v38  ;;  %v86_v42 = vsel %vm80_vm2, %v73_v35, 920167782  ;;  %v90_v43 = vsel %vm80_vm2, %v76_v36, 1326507024  ;;  %v437_v33 = vld [vmem:[#allocation5 + $0xa] ss:$0 sm:$0xff] }
  0x3d   :  { %v87_v44 = vsel %vm79_vm4, %v70_v34, %v86_v42  ;;  %v91_v45 = vsel %vm79_vm4, %v73_v35, %v90_v43  ;;  %v84_v46 = vsel %vm78_vm3, %v81_v37, %v83_v41  ;;  %v438_v42 = vld [vmem:[#allocation5 + $0x3] ss:$0 sm:$0xff] }
  0x3e   :  { %v88_v47 = vsel %vm78_vm3, %v85_v39, %v87_v44  ;;  %v92_v48 = vsel %vm78_vm3, %v89_v40, %v91_v45  ;;  %v100_v53 = vmul.u32 %v93_v31, %v84_v46  ;;  %v439_v45 = vld [vmem:[#allocation5 + $0xb] ss:$0 sm:$0xff] }
  0x3f   :  { %v607_v49 = vmul.u32.u64.low %v93_v31, %v92_v48  ;;  %v608_v50 = vmul.u32.u64.high %v93_v31, %v92_v48, %v607_v49  ;;  %v610_v51 = vmul.u32.u64.low %v93_v31, %v88_v47  ;;  %v611_v52 = vmul.u32.u64.high %v93_v31, %v88_v47, %v610_v51 }
  0x41   :  { %vm102_vm5 = vc.u32 %v608_v50, %v610_v51  ;;  %v103_v54 = vadd.s32 1, %v611_v52  ;;  %v101_v1 = vadd.s32 %v610_v51, %v608_v50 }
  0x43   :  { %v104_v55 = vsel %vm102_vm5, %v103_v54, %v611_v52  ;;  %v440_v54 = vld [vmem:[#allocation5 + $0x4] ss:$0 sm:$0xff] }
  0x44   :  { %v105_v56 = vadd.s32 %v104_v55, %v100_v53  ;;  %v441_v55 = vld [vmem:[#allocation5 + $0xc] ss:$0 sm:$0xff] }
  0x46   :  { %v106_v57 = vadd.s32 536870912, %v105_v56 }
  0x48   :  { %v107_v58 = vshrl.u32 %v106_v57, 30 }
  0x4a   :  { %v108_v59 = vshll.u32 %v107_v58, 30  ;;  %v131_v15 = vsub.s32 4, %v107_v58 }
  0x4c   :  { %v109_v60 = vsub.s32 %v105_v56, %v108_v59  ;;  %v132_v18 = vsel %vm47_vm7, %v131_v15, %v107_v58 }
  0x4d   :  { %v134_v21 = vsel %vm46_vm8, 0, %v132_v18 }
  0x4e   :  { %v111_v61 = vsub.s32 0, %v109_v60  ;;  %v138_v22 = vadd.s32 3, %v134_v21  ;;  %v242_v24 = vand.u32 3, %v134_v21 }
  0x50   :  { %v429_v62 = vmin.u32 %v111_v61, %v109_v60  ;;  %v139_v23 = vand.u32 3, %v138_v22  ;;  %vm247_vm10 = vcmp.eq.s32.totalorder %v242_v24, 2  ;;  %vm244_vm12 = vcmp.eq.s32.totalorder %v242_v24, 0 }
  0x51   :  { %vm243_vm14 = vcmp.lt.s32.totalorder %v242_v24, 2 }
  0x52   :  { %v113_v63 = vclz %v429_v62  ;;  %vm144_vm9 = vcmp.eq.s32.totalorder %v139_v23, 2  ;;  %vm141_vm11 = vcmp.eq.s32.totalorder %v139_v23, 0  ;;  %vm140_vm13 = vcmp.lt.s32.totalorder %v139_v23, 2 }
  0x54   :  { %v430_v0 = vadd.s32 4294967294, %v113_v63 }
  0x56   :  { %vm431_vm6 = vcmp.lt.s32.totalorder %v430_v0, 0 }
  0x57   :  { %v116_v3 = vsel %vm431_vm6, 0, %v430_v0 }
  0x58   :  { %v117_v4 = vsub.s32 32, %v116_v3  ;;  %v118_v6 = vshll.u32 %v109_v60, %v116_v3  ;;  %v121_v7 = vsub.s32 4294967266, %v116_v3 }
  0x5a   :  { %v119_v8 = vshrl.u32 %v101_v1, %v117_v4  ;;  %v122_v9 = vadd.s32 127, %v121_v7  ;;  %v442_v1 = vld [vmem:[#allocation5 + $0x5] ss:$0 sm:$0xff] }
  0x5c   :  { %v120_v10 = vor.u32 %v119_v8, %v118_v6  ;;  %v123_v11 = vshll.u32 %v122_v9, 23  ;;  %v443_v6 = vld [vmem:[#allocation5 + $0xd] ss:$0 sm:$0xff] }
  0x5e   :  { %v124_v12 = vor.u32 4788187, %v123_v11  ;;  %v127_v13 = vcvt.s32.f32 %v120_v10 }
  0x60   :  { %v125_v14 = vand.u32 2147483647, %v124_v12 }
  0x62   :  { %v128_v16 = vmul.f32 %v127_v13, %v125_v14 }
  0x64   :  { %v129_v17 = vxor.u32 2147483648, %v128_v16 }
  0x66   :  { %v130_v19 = vsel %vm47_vm7, %v129_v17, %v128_v16  ;;  %v444_v16 = vld [vmem:[#allocation5 + $0x6] ss:$0 sm:$0xff]  ;;  %v445_v17 = vld [vmem:[#allocation5 + $0xe] ss:$0 sm:$0xff] }
  0x67   :  { %v133_v20 = vsel %vm46_vm8, %v601_v2, %v130_v19 }
  0x68   :  { %468 = vcosq.f32 %v133_v20 }
  0x69   :  { %470 = vsinq.f32 %v133_v20 }
  0x72   :  { %v469_v25 = vpop.eup %468 }
  0x73   :  { %v471_v26 = vpop.eup %470  ;;  %v145_v27 = vxor.u32 2147483648, %v469_v25 }
  0x74   :  { %v142_v5 = vxor.u32 2147483648, %v471_v26 }
  0x75   :  { %v146_v28 = vsel %vm144_vm9, %v145_v27, %v471_v26  ;;  %v249_v29 = vsel %vm247_vm10, %v145_v27, %v471_v26  ;;  %v446_v27 = vld [vmem:[#allocation5 + $0x7] ss:$0 sm:$0xff] }
  0x76   :  { %v143_v30 = vsel %vm141_vm11, %v469_v25, %v142_v5  ;;  %v246_v31 = vsel %vm244_vm12, %v469_v25, %v142_v5 }
  0x77   :  { %v147_v34 = vsel %vm140_vm13, %v143_v30, %v146_v28  ;;  %v250_v35 = vsel %vm243_vm14, %v246_v31, %v249_v29  ;;  %v447_v29 = vld [vmem:[#allocation5 + $0xf] ss:$0 sm:$0xff] }
  0x78   :  { %v622_v36 = vsel %vm137_vm15, nan, %v147_v34  ;;  %v624_v37 = vsel %vm137_vm15, nan, %v250_v35 }
  0x79   :  { %v257_v38 = vmul.f32 %v436_v32, %v622_v36  ;;  %v263_v39 = vmul.f32 %v437_v33, %v624_v37  ;;  %v265_v40 = vmul.f32 %v624_v37, %v622_v36  ;;  %v267_v2 = vmul.f32 %v624_v37, %v624_v37 }
  0x7a   :  { %v268_v41 = vmul.f32 %v622_v36, %v622_v36 }
  0x7b   :  { %v264_v43 = vadd.f32 %v263_v39, %v257_v38  ;;  %v266_v44 = vadd.f32 %v265_v40, %v265_v40 }
  0x7c   :  { %v269_v46 = vsub.f32 %v267_v2, %v268_v41  ;;  %v448_v2 = vld [vmem:[#allocation5 + $0x8] ss:$0 sm:$0xff]  ;;  %v449_v41 = vld [vmem:[#allocation5 + $0x10] ss:$0 sm:$0xff] }
  0x7d   :  { %v275_v47 = vmul.f32 %v438_v42, %v266_v44  ;;  %v284_v48 = vmul.f32 %v266_v44, %v624_v37  ;;  %v288_v49 = vmul.f32 %v266_v44, %v622_v36 }
  0x7e   :  { %v282_v50 = vmul.f32 %v439_v45, %v269_v46  ;;  %v285_v51 = vmul.f32 %v269_v46, %v622_v36  ;;  %v287_v52 = vmul.f32 %v269_v46, %v624_v37 }
  0x7f   :  { %v276_v53 = vadd.f32 %v275_v47, %v264_v43 }
  0x80   :  { %v286_v56 = vadd.f32 %v285_v51, %v284_v48  ;;  %v289_v57 = vsub.f32 %v287_v52, %v288_v49  ;;  %v450_v51 = vld [vmem:[#allocation5 + $0x9] ss:$0 sm:$0xff] }
  0x81   :  { %v283_v58 = vadd.f32 %v282_v50, %v276_v53 }
  0x82   :  { %v295_v59 = vmul.f32 %v440_v54, %v286_v56  ;;  %v302_v60 = vmul.f32 %v441_v55, %v289_v57  ;;  %v304_v61 = vmul.f32 %v286_v56, %v624_v37  ;;  %v305_v62 = vmul.f32 %v289_v57, %v622_v36  ;;  %v451_v54 = vld [vmem:[#allocation5 + $0x11] ss:$0 sm:$0xff] }
  0x83   :  { %v307_v63 = vmul.f32 %v289_v57, %v624_v37  ;;  %v308_v0 = vmul.f32 %v286_v56, %v622_v36 }
  0x84   :  { %v296_v3 = vadd.f32 %v295_v59, %v283_v58  ;;  %v306_v4 = vadd.f32 %v305_v62, %v304_v61 }
  0x85   :  { %v309_v7 = vsub.f32 %v307_v63, %v308_v0 }
  0x86   :  { %v303_v8 = vadd.f32 %v302_v60, %v296_v3  ;;  %v315_v9 = vmul.f32 %v442_v1, %v306_v4  ;;  %v324_v10 = vmul.f32 %v306_v4, %v624_v37  ;;  %v328_v11 = vmul.f32 %v306_v4, %v622_v36  ;;  %v452_v60 = vld [vmem:[#allocation5 + $0x1] ss:$0 sm:$0xff] }
  0x87   :  { %v322_v12 = vmul.f32 %v443_v6, %v309_v7  ;;  %v325_v13 = vmul.f32 %v309_v7, %v622_v36  ;;  %v327_v14 = vmul.f32 %v309_v7, %v624_v37 }
  0x88   :  { %v316_v15 = vadd.f32 %v315_v9, %v303_v8 }
  0x89   :  { %v326_v18 = vadd.f32 %v325_v13, %v324_v10  ;;  %v329_v19 = vsub.f32 %v327_v14, %v328_v11 }
  0x8a   :  { %v323_v20 = vadd.f32 %v322_v12, %v316_v15 }
  0x8b   :  { %v335_v21 = vmul.f32 %v444_v16, %v326_v18  ;;  %v342_v22 = vmul.f32 %v445_v17, %v329_v19  ;;  %v344_v23 = vmul.f32 %v326_v18, %v624_v37  ;;  %v345_v24 = vmul.f32 %v329_v19, %v622_v36 }
  0x8c   :  { %v347_v25 = vmul.f32 %v329_v19, %v624_v37  ;;  %v348_v26 = vmul.f32 %v326_v18, %v622_v36 }
  0x8d   :  { %v336_v5 = vadd.f32 %v335_v21, %v323_v20  ;;  %v346_v28 = vadd.f32 %v345_v24, %v344_v23 }
  0x8e   :  { %v349_v30 = vsub.f32 %v347_v25, %v348_v26 }
  0x8f   :  { %v343_v31 = vadd.f32 %v342_v22, %v336_v5  ;;  %v355_v32 = vmul.f32 %v446_v27, %v346_v28  ;;  %v364_v33 = vmul.f32 %v346_v28, %v624_v37  ;;  %v368_v34 = vmul.f32 %v346_v28, %v622_v36 }
  0x90   :  { %v362_v35 = vmul.f32 %v447_v29, %v349_v30  ;;  %v365_v38 = vmul.f32 %v349_v30, %v622_v36  ;;  %v367_v39 = vmul.f32 %v349_v30, %v624_v37 }
  0x91   :  { %v356_v40 = vadd.f32 %v355_v32, %v343_v31 }
  0x92   :  { %v366_v42 = vadd.f32 %v365_v38, %v364_v33  ;;  %v369_v43 = vsub.f32 %v367_v39, %v368_v34 }
  0x93   :  { %v363_v44 = vadd.f32 %v362_v35, %v356_v40 }
  0x94   :  { %v375_v45 = vmul.f32 %v448_v2, %v366_v42  ;;  %v382_v46 = vmul.f32 %v449_v41, %v369_v43  ;;  %v384_v47 = vmul.f32 %v366_v42, %v624_v37  ;;  %v385_v48 = vmul.f32 %v369_v43, %v622_v36 }
  0x95   :  { %v387_v49 = vmul.f32 %v369_v43, %v624_v37  ;;  %v388_v50 = vmul.f32 %v366_v42, %v622_v36 }
  0x96   :  { %v376_v52 = vadd.f32 %v375_v45, %v363_v44  ;;  %v386_v53 = vadd.f32 %v385_v48, %v384_v47 }
  0x97   :  { %v389_v55 = vsub.f32 %v387_v49, %v388_v50 }
  0x98   :  { %v383_v56 = vadd.f32 %v382_v46, %v376_v52  ;;  %v395_v57 = vmul.f32 %v450_v51, %v386_v53 }
  0x99   :  { %v402_v58 = vmul.f32 %v451_v54, %v389_v55 }
  0x9a   :  { %v396_v59 = vadd.f32 %v395_v57, %v383_v56 }
  0x9c   :  { %v403_v61 = vadd.f32 %v402_v58, %v396_v59 }
  0x9e   :  { %v409_v62 = vadd.f32 %v452_v60, %v403_v61 }
  0xa0   :  { %410 = vst [vmem:[#allocation7] sm:$0xff] %v409_v62 }
  0xa1   :  { %527 = shalt.err (!%p524_p6)
}
  0xa2   :  { %s528_s10 = scalar_lea.hbm %s672_s2, 128 }
  0xa3   :  { %p529_p7 = scmp.ne.s32.totalorder %s672_s2, %s528_s10  ;;  %p532_p8 = scmp.lt.u32.totalorder %s528_s10, %s672_s2 }
  0xa5   :  { %p534_p9 = pnand %p532_p8, %p529_p7 }
  0xa7   :  { %537 = shalt.err (!%p534_p9)
}
  0xa8   :  { %420 = dma.vmem_to_hbm [thread:$0]  %s418_s6, 128, %s672_s2, [#allocation4]  }
  0xa9   :  { %542 = dma.done.wait [#allocation4], 128  }
  0xaa   :  { %543 = vsyncadd [#allocation4], 4294967168 }
  0xab   :  { %424 = vsyncpa [#allocation3], 1 }
  0xac   :  { %425 = vsyncpa [#allocation6], 1 }
  0xad   :  { %426 = vsyncpa [#allocation4], 1 }

</bundles_post_ra>
